<compile_context>
chip_gen: v6e
topology: v6e:2x2x1
jax: 0.10.0
libtpu: 0.0.40
codegen_flags: <defaults>
</compile_context>

<pallas_src>
import jax
import jax.numpy as jnp
from jax.experimental import pallas as pl
from jax.experimental.pallas import tpu as pltpu


# ----------------------------------------------------------------------------
# Pallas kernel
# ----------------------------------------------------------------------------
def discriminator_kernel(z_ref, w1_ref, b1_ref, wres_ref, bres_ref,
                         wlin_ref, blin_ref, out_ref, pad_ref):
    # z_ref   : (B, L, V)      f32   input, channels-last
    # w1_ref  : (V, D)         bf16  first 1x1 conv weight (in, out)
    # b1_ref  : (1, D)         f32
    # wres_ref: (R, K*D, D)    bf16  residual conv weights, row index k*D+din,
    #                                pre-scaled by 0.3
    # bres_ref: (R, D)         f32   residual conv bias, pre-scaled by 0.3
    # wlin_ref: (L, D)         f32   final linear weight, wlin[l,d] = W[0, d*L+l]
    # blin_ref: (1, 1)         f32   SMEM scalar
    # out_ref : (B, 1)         f32
    # pad_ref : (B, L+K-1, D)  bf16  VMEM scratch ("same"-padding buffer)
    B, L, V = z_ref.shape
    R, KD, D = wres_ref.shape
    K = KD // D
    pad = (K - 1) // 2

    # ---- first conv (kernel width 1 == per-position matmul), flattened 2-D --
    z2d = z_ref[...].reshape(B * L, V).astype(jnp.bfloat16)
    h = jnp.dot(z2d, w1_ref[...], preferred_element_type=jnp.float32)
    h = h + b1_ref[...]                       # (1, D) broadcast over (B*L, D)

    # Zero the padded scratch once; only its middle is rewritten each layer,
    # so the halo stays zero and emulates Conv1d "same" zero padding for free.
    pad_ref[...] = jnp.zeros_like(pad_ref)

    # ---- residual blocks: h += Conv1d_scaled(ReLU(h))  (0.3 folded) ---------
    for r in range(R):                        # static python loop, R is small
        a = jnp.maximum(h, 0.0).astype(jnp.bfloat16)     # cast once per layer
        pad_ref[:, pl.ds(pad, L), :] = a.reshape(B, L, D)
        a_pad = pad_ref[...]
        # im2col: K shifted views concatenated along lanes -> (B, L, K*D)
        cols = jnp.concatenate([a_pad[:, k:k + L, :] for k in range(K)],
                               axis=2)
        conv = jnp.dot(cols.reshape(B * L, K * D), wres_ref[r],
                       preferred_element_type=jnp.float32)
        h = h + conv + bres_ref[pl.ds(r, 1), :]  # bias already scaled by 0.3

    # ---- final linear: score[b] = sum_{l,d} h[b,l,d] * wlin[l,d] + bias -----
    h3 = h.reshape(B, L, D)
    s1 = jnp.sum(h3 * wlin_ref[...][None, :, :], axis=2, keepdims=True)
    score = jnp.sum(s1, axis=1)               # (B, 1)
    out_ref[...] = score + blin_ref[0, 0]


def discriminator_forward(z_blv, w1, b1, wres, bres, wlin_ld, blin):
    B, L, V = z_blv.shape
    R, KD, D = wres.shape
    K = KD // D
    # NOTE: at these tiny shapes a single grid step keeps the matmul M dim
    # (B*L) as large as possible; for big B, tile over batch and mark the axis
    # "parallel" (2 TensorCores on v7x).
    return pl.pallas_call(
        discriminator_kernel,
        out_shape=jax.ShapeDtypeStruct((B, 1), jnp.float32),
        grid=(1,),
        in_specs=[
            pl.BlockSpec((B, L, V), lambda i: (0, 0, 0)),
            pl.BlockSpec((V, D), lambda i: (0, 0)),
            pl.BlockSpec((1, D), lambda i: (0, 0)),
            pl.BlockSpec((R, KD, D), lambda i: (0, 0, 0)),
            pl.BlockSpec((R, D), lambda i: (0, 0)),
            pl.BlockSpec((L, D), lambda i: (0, 0)),
            pl.BlockSpec(memory_space=pltpu.MemorySpace.SMEM),   # blin scalar
        ],
        out_specs=pl.BlockSpec((B, 1), lambda i: (0, 0)),
        scratch_shapes=[pltpu.VMEM((B, L + K - 1, D), jnp.bfloat16)],
        compiler_params=pltpu.CompilerParams(
            dimension_semantics=("arbitrary",)),
    )(z_blv, w1, b1, wres, bres, wlin_ld, blin)


# ----------------------------------------------------------------------------
# Glue: deterministic parameter init + spectral normalization (power iteration)
# ----------------------------------------------------------------------------
def spectral_normalize(w2d, n_iter=30):
    u = jax.random.normal(jax.random.PRNGKey(42), (w2d.shape[0],), jnp.float32)
    u = u / (jnp.linalg.norm(u) + 1e-12)
    v = w2d.T @ u
    v = v / (jnp.linalg.norm(v) + 1e-12)
    for _ in range(n_iter):
        v = w2d.T @ u
        v = v / (jnp.linalg.norm(v) + 1e-12)
        u = w2d @ v
        u = u / (jnp.linalg.norm(u) + 1e-12)
    sigma = u @ (w2d @ v)
    return w2d / sigma


def uniform_init(key, shape, fan_in):
    bound = 1.0 / jnp.sqrt(jnp.float32(fan_in))
    return jax.random.uniform(key, shape, jnp.float32, -bound, bound)


def reference_forward(z_ncw, w1_t, b1_t, wres_t, bres_t, wlin_t, blin_t):
    """Pure-JAX f32 reference mirroring the PyTorch module (NCW layout)."""
    B, V, L = z_ncw.shape
    K = wres_t[0].shape[-1]
    pad = (K - 1) // 2
    h = jnp.einsum('bvl,dv->bdl', z_ncw, w1_t) + b1_t[None, :, None]
    for w, b in zip(wres_t, bres_t):            # w: (Dout, Din, K), b: (Dout,)
        a = jnp.maximum(h, 0.0)
        a_pad = jnp.pad(a, ((0, 0), (0, 0), (pad, pad)))
        conv = jnp.zeros_like(h)
        for k in range(K):
            conv = conv + jnp.einsum('bdl,ed->bel',
                                     a_pad[:, :, k:k + L], w[:, :, k])
        conv = conv + b[None, :, None]
        h = h + 0.3 * conv
    flat = h.reshape(B, -1)                     # torch order: index d*L + l
    return flat @ wlin_t.T + blin_t[None, :]


if __name__ == "__main__":
    # Small, module-consistent shapes.
    B, vocab_size, gen_dim, seq_len, res_layers = 2, 8, 32, 16, 2
    K = 5  # filter_width
    D, L, V, R = gen_dim, seq_len, vocab_size, res_layers

    key = jax.random.PRNGKey(0)
    k_z, k_w1, k_b1, k_wr, k_br, k_wl, k_bl = jax.random.split(key, 7)

    # Input z: PyTorch shape (B, vocab_size, seq_len)  (NCW).
    z_ncw = jax.random.normal(k_z, (B, V, L), jnp.float32)
    z_blv = jnp.transpose(z_ncw, (0, 2, 1))     # kernel layout (B, L, V)

    # --- torch-layout, spectrally-normalized f32 parameters ------------------
    w1_t = spectral_normalize(uniform_init(k_w1, (D, V), V))          # (D, V)
    b1_t = uniform_init(k_b1, (D,), V)

    kr = jax.random.split(k_wr, R)
    kb = jax.random.split(k_br, R)
    wres_t, bres_t = [], []
    for r in range(R):
        wt = uniform_init(kr[r], (D, D, K), D * K)                    # (Do, Di, K)
        wt = spectral_normalize(wt.reshape(D, -1)).reshape(D, D, K)
        wres_t.append(wt)
        bres_t.append(uniform_init(kb[r], (D,), D * K))

    wlin_t = spectral_normalize(uniform_init(k_wl, (1, D * L), D * L))  # (1, D*L)
    blin_t = uniform_init(k_bl, (1,), D * L)

    # --- kernel-layout parameter prep (fold 0.3, reshape, cast to bf16) ------
    w1_k = w1_t.T.astype(jnp.bfloat16)                                # (V, D)
    b1_k = b1_t.reshape(1, D)                                         # (1, D)
    # (Dout, Din, K) -> (K, Din, Dout) -> (K*D, D); fold the 0.3 residual scale.
    wres_k = jnp.stack(
        [0.3 * jnp.transpose(w, (2, 1, 0)).reshape(K * D, D) for w in wres_t],
        axis=0).astype(jnp.bfloat16)                                  # (R, K*D, D)
    bres_k = 0.3 * jnp.stack(bres_t, axis=0)                          # (R, D)
    # torch flattens (B, D, L) row-major -> index d*L + l.
    wlin_k = wlin_t.reshape(D, L).T                                   # (L, D)
    blin_k = blin_t.reshape(1, 1)                                     # (1, 1)

    out = discriminator_forward(z_blv, w1_k, b1_k, wres_k, bres_k,
                                wlin_k, blin_k)
    out = jax.block_until_ready(out)

    ref = reference_forward(z_ncw, w1_t, b1_t, wres_t, bres_t, wlin_t, blin_t)
    assert out.shape == (B, 1)
    # Kernel uses bf16 inputs for its matmuls (f32 accumulation), reference is
    # full f32 -> loose tolerance for the rounding difference.
    assert jnp.allclose(out, ref, atol=5e-2, rtol=5e-2), (out, ref)

    print("KERNEL_OK")
</pallas_src>

<mosaic_0001>
module attributes {stable_mosaic.version = 11 : i64} {
  func.func @discriminator_kernel(%arg0: i32, %arg1: memref<2x16x8xf32, #tpu.memory_space<vmem>>, %arg2: memref<8x32xbf16, #tpu.memory_space<vmem>>, %arg3: memref<1x32xf32, #tpu.memory_space<vmem>>, %arg4: memref<2x160x32xbf16, #tpu.memory_space<vmem>>, %arg5: memref<2x32xf32, #tpu.memory_space<vmem>>, %arg6: memref<16x32xf32, #tpu.memory_space<vmem>>, %arg7: memref<1x1xf32, #tpu.memory_space<smem>>, %arg8: memref<2x1xf32, #tpu.memory_space<vmem>>, %arg9: memref<2x20x32xbf16, #tpu.memory_space<vmem>>) attributes {dimension_semantics = [#tpu.dimension_semantics<arbitrary>], iteration_bounds = array<i64: 1>, scalar_prefetch = 0 : i64, scratch_operands = 1 : i64, tpu.core_type = #tpu.core_type<tc>, window_params = [{pipeline_mode = #tpu.pipeline_mode<synchronous>, transform_indices = @transform_0, window_bounds = array<i64: 2, 16, 8>}, {pipeline_mode = #tpu.pipeline_mode<synchronous>, transform_indices = @transform_1, window_bounds = array<i64: 8, 32>}, {pipeline_mode = #tpu.pipeline_mode<synchronous>, transform_indices = @transform_2, window_bounds = array<i64: 1, 32>}, {pipeline_mode = #tpu.pipeline_mode<synchronous>, transform_indices = @transform_3, window_bounds = array<i64: 2, 160, 32>}, {pipeline_mode = #tpu.pipeline_mode<synchronous>, transform_indices = @transform_4, window_bounds = array<i64: 2, 32>}, {pipeline_mode = #tpu.pipeline_mode<synchronous>, transform_indices = @transform_5, window_bounds = array<i64: 16, 32>}, {transform_indices = @transform_6, window_bounds = array<i64: 1, 1>}, {pipeline_mode = #tpu.pipeline_mode<synchronous>, transform_indices = @transform_7, window_bounds = array<i64: 2, 1>}]} {
    %c0 = arith.constant 0 : index
    %c0_0 = arith.constant 0 : index
    %c0_1 = arith.constant 0 : index
    %0 = vector.load %arg1[%c0, %c0_0, %c0_1] : memref<2x16x8xf32, #tpu.memory_space<vmem>>, vector<2x16x8xf32>
    %1 = vector.shape_cast %0 : vector<2x16x8xf32> to vector<32x8xf32>
    %2 = arith.truncf %1 : vector<32x8xf32> to vector<32x8xbf16>
    %c0_2 = arith.constant 0 : index
    %c0_3 = arith.constant 0 : index
    %3 = vector.load %arg2[%c0_2, %c0_3] : memref<8x32xbf16, #tpu.memory_space<vmem>>, vector<8x32xbf16>
    %cst = arith.constant dense<0.000000e+00> : vector<32x32xf32>
    %4 = tpu.matmul %2, %3, %cst {dimension_numbers = #tpu.dot_dimension_numbers<[1], [0], [0], [1], [0, 0, 1, 1], [], []>} : vector<32x8xbf16>, vector<8x32xbf16>, vector<32x32xf32> -> vector<32x32xf32>
    %c0_4 = arith.constant 0 : index
    %c0_5 = arith.constant 0 : index
    %5 = vector.load %arg3[%c0_4, %c0_5] : memref<1x32xf32, #tpu.memory_space<vmem>>, vector<1x32xf32>
    %6 = vector.broadcast %5 : vector<1x32xf32> to vector<32x32xf32>
    %7 = arith.addf %4, %6 : vector<32x32xf32>
    %cst_6 = arith.constant 0.000000e+00 : bf16
    %8 = vector.broadcast %cst_6 : bf16 to vector<2x20x32xbf16>
    %c0_7 = arith.constant 0 : index
    %c0_8 = arith.constant 0 : index
    %c0_9 = arith.constant 0 : index
    %9 = vector.load %arg9[%c0_7, %c0_8, %c0_9] : memref<2x20x32xbf16, #tpu.memory_space<vmem>>, vector<2x20x32xbf16>
    tpu.vector_store %arg9[%c0_7, %c0_8, %c0_9], %8 {strides = array<i32>} : memref<2x20x32xbf16, #tpu.memory_space<vmem>>, vector<2x20x32xbf16>,
    %cst_10 = arith.constant 0.000000e+00 : f32
    %10 = vector.broadcast %cst_10 : f32 to vector<32x32xf32>
    %11 = arith.maximumf %7, %10 : vector<32x32xf32>
    %12 = arith.truncf %11 : vector<32x32xf32> to vector<32x32xbf16>
    %13 = vector.shape_cast %12 : vector<32x32xbf16> to vector<2x16x32xbf16>
    %c0_11 = arith.constant 0 : index
    %c2 = arith.constant 2 : index
    %c0_12 = arith.constant 0 : index
    %14 = vector.load %arg9[%c0_11, %c2, %c0_12] : memref<2x20x32xbf16, #tpu.memory_space<vmem>>, vector<2x16x32xbf16>
    tpu.vector_store %arg9[%c0_11, %c2, %c0_12], %13 {strides = array<i32>} : memref<2x20x32xbf16, #tpu.memory_space<vmem>>, vector<2x16x32xbf16>,
    %c0_13 = arith.constant 0 : index
    %c0_14 = arith.constant 0 : index
    %c0_15 = arith.constant 0 : index
    %15 = vector.load %arg9[%c0_13, %c0_14, %c0_15] : memref<2x20x32xbf16, #tpu.memory_space<vmem>>, vector<2x20x32xbf16>
    %16 = vector.extract_strided_slice %15 {offsets = [0, 0, 0], sizes = [2, 16, 32], strides = [1, 1, 1]} : vector<2x20x32xbf16> to vector<2x16x32xbf16>
    %17 = vector.extract_strided_slice %15 {offsets = [0, 1, 0], sizes = [2, 16, 32], strides = [1, 1, 1]} : vector<2x20x32xbf16> to vector<2x16x32xbf16>
    %18 = vector.extract_strided_slice %15 {offsets = [0, 2, 0], sizes = [2, 16, 32], strides = [1, 1, 1]} : vector<2x20x32xbf16> to vector<2x16x32xbf16>
    %19 = vector.extract_strided_slice %15 {offsets = [0, 3, 0], sizes = [2, 16, 32], strides = [1, 1, 1]} : vector<2x20x32xbf16> to vector<2x16x32xbf16>
    %20 = vector.extract_strided_slice %15 {offsets = [0, 4, 0], sizes = [2, 16, 32], strides = [1, 1, 1]} : vector<2x20x32xbf16> to vector<2x16x32xbf16>
    %21 = tpu.concatenate %16, %17, %18, %19, %20 in 2 : vector<2x16x32xbf16>, vector<2x16x32xbf16>, vector<2x16x32xbf16>, vector<2x16x32xbf16>, vector<2x16x32xbf16> -> vector<2x16x160xbf16>
    %22 = vector.shape_cast %21 : vector<2x16x160xbf16> to vector<32x160xbf16>
    %c0_16 = arith.constant 0 : index
    %c0_17 = arith.constant 0 : index
    %c0_18 = arith.constant 0 : index
    %23 = vector.load %arg4[%c0_16, %c0_17, %c0_18] : memref<2x160x32xbf16, #tpu.memory_space<vmem>>, vector<1x160x32xbf16>
    %24 = vector.shape_cast %23 : vector<1x160x32xbf16> to vector<160x32xbf16>
    %cst_19 = arith.constant dense<0.000000e+00> : vector<32x32xf32>
    %25 = tpu.matmul %22, %24, %cst_19 {dimension_numbers = #tpu.dot_dimension_numbers<[1], [0], [0], [1], [0, 0, 1, 1], [], []>} : vector<32x160xbf16>, vector<160x32xbf16>, vector<32x32xf32> -> vector<32x32xf32>
    %26 = arith.addf %7, %25 : vector<32x32xf32>
    %c0_20 = arith.constant 0 : index
    %c0_21 = arith.constant 0 : index
    %27 = vector.load %arg5[%c0_20, %c0_21] : memref<2x32xf32, #tpu.memory_space<vmem>>, vector<1x32xf32>
    %28 = vector.broadcast %27 : vector<1x32xf32> to vector<32x32xf32>
    %29 = arith.addf %26, %28 : vector<32x32xf32>
    %cst_22 = arith.constant 0.000000e+00 : f32
    %30 = vector.broadcast %cst_22 : f32 to vector<32x32xf32>
    %31 = arith.maximumf %29, %30 : vector<32x32xf32>
    %32 = arith.truncf %31 : vector<32x32xf32> to vector<32x32xbf16>
    %33 = vector.shape_cast %32 : vector<32x32xbf16> to vector<2x16x32xbf16>
    %c0_23 = arith.constant 0 : index
    %c2_24 = arith.constant 2 : index
    %c0_25 = arith.constant 0 : index
    %34 = vector.load %arg9[%c0_23, %c2_24, %c0_25] : memref<2x20x32xbf16, #tpu.memory_space<vmem>>, vector<2x16x32xbf16>
    tpu.vector_store %arg9[%c0_23, %c2_24, %c0_25], %33 {strides = array<i32>} : memref<2x20x32xbf16, #tpu.memory_space<vmem>>, vector<2x16x32xbf16>,
    %c0_26 = arith.constant 0 : index
    %c0_27 = arith.constant 0 : index
    %c0_28 = arith.constant 0 : index
    %35 = vector.load %arg9[%c0_26, %c0_27, %c0_28] : memref<2x20x32xbf16, #tpu.memory_space<vmem>>, vector<2x20x32xbf16>
    %36 = vector.extract_strided_slice %35 {offsets = [0, 0, 0], sizes = [2, 16, 32], strides = [1, 1, 1]} : vector<2x20x32xbf16> to vector<2x16x32xbf16>
    %37 = vector.extract_strided_slice %35 {offsets = [0, 1, 0], sizes = [2, 16, 32], strides = [1, 1, 1]} : vector<2x20x32xbf16> to vector<2x16x32xbf16>
    %38 = vector.extract_strided_slice %35 {offsets = [0, 2, 0], sizes = [2, 16, 32], strides = [1, 1, 1]} : vector<2x20x32xbf16> to vector<2x16x32xbf16>
    %39 = vector.extract_strided_slice %35 {offsets = [0, 3, 0], sizes = [2, 16, 32], strides = [1, 1, 1]} : vector<2x20x32xbf16> to vector<2x16x32xbf16>
    %40 = vector.extract_strided_slice %35 {offsets = [0, 4, 0], sizes = [2, 16, 32], strides = [1, 1, 1]} : vector<2x20x32xbf16> to vector<2x16x32xbf16>
    %41 = tpu.concatenate %36, %37, %38, %39, %40 in 2 : vector<2x16x32xbf16>, vector<2x16x32xbf16>, vector<2x16x32xbf16>, vector<2x16x32xbf16>, vector<2x16x32xbf16> -> vector<2x16x160xbf16>
    %42 = vector.shape_cast %41 : vector<2x16x160xbf16> to vector<32x160xbf16>
    %c1 = arith.constant 1 : index
    %c0_29 = arith.constant 0 : index
    %c0_30 = arith.constant 0 : index
    %43 = vector.load %arg4[%c1, %c0_29, %c0_30] : memref<2x160x32xbf16, #tpu.memory_space<vmem>>, vector<1x160x32xbf16>
    %44 = vector.shape_cast %43 : vector<1x160x32xbf16> to vector<160x32xbf16>
    %cst_31 = arith.constant dense<0.000000e+00> : vector<32x32xf32>
    %45 = tpu.matmul %42, %44, %cst_31 {dimension_numbers = #tpu.dot_dimension_numbers<[1], [0], [0], [1], [0, 0, 1, 1], [], []>} : vector<32x160xbf16>, vector<160x32xbf16>, vector<32x32xf32> -> vector<32x32xf32>
    %46 = arith.addf %29, %45 : vector<32x32xf32>
    %c1_32 = arith.constant 1 : index
    %c0_33 = arith.constant 0 : index
    %47 = vector.load %arg5[%c1_32, %c0_33] : memref<2x32xf32, #tpu.memory_space<vmem>>, vector<1x32xf32>
    %48 = vector.broadcast %47 : vector<1x32xf32> to vector<32x32xf32>
    %49 = arith.addf %46, %48 : vector<32x32xf32>
    %50 = vector.shape_cast %49 : vector<32x32xf32> to vector<2x16x32xf32>
    %c0_34 = arith.constant 0 : index
    %c0_35 = arith.constant 0 : index
    %51 = vector.load %arg6[%c0_34, %c0_35] : memref<16x32xf32, #tpu.memory_space<vmem>>, vector<16x32xf32>
    %52 = vector.shape_cast %51 : vector<16x32xf32> to vector<1x16x32xf32>
    %53 = vector.broadcast %52 : vector<1x16x32xf32> to vector<2x16x32xf32>
    %54 = arith.mulf %50, %53 : vector<2x16x32xf32>
    %cst_36 = arith.constant dense<0.000000e+00> : vector<2x16xf32>
    %55 = vector.multi_reduction <add>, %54, %cst_36 [2] : vector<2x16x32xf32> to vector<2x16xf32>
    %56 = vector.shape_cast %55 : vector<2x16xf32> to vector<2x16x1xf32>
    %cst_37 = arith.constant dense<0.000000e+00> : vector<2x1xf32>
    %57 = vector.multi_reduction <add>, %56, %cst_37 [1] : vector<2x16x1xf32> to vector<2x1xf32>
    %c0_38 = arith.constant 0 : index
    %c0_39 = arith.constant 0 : index
    %58 = memref.load %arg7[%c0_38, %c0_39] : memref<1x1xf32, #tpu.memory_space<smem>>
    %59 = vector.broadcast %58 : f32 to vector<2x1xf32>
    %60 = arith.addf %57, %59 : vector<2x1xf32>
    %c0_40 = arith.constant 0 : index
    %c0_41 = arith.constant 0 : index
    %61 = vector.load %arg8[%c0_40, %c0_41] : memref<2x1xf32, #tpu.memory_space<vmem>>, vector<2x1xf32>
    tpu.vector_store %arg8[%c0_40, %c0_41], %60 {strides = array<i32>} : memref<2x1xf32, #tpu.memory_space<vmem>>, vector<2x1xf32>,
    return
  }
  func.func @transform_0(%arg0: i32) -> (i32, i32, i32) {
    %c0_i32 = arith.constant 0 : i32
    %c0_i32_0 = arith.constant 0 : i32
    %c0_i32_1 = arith.constant 0 : i32
    %c0_i32_2 = arith.constant 0 : i32
    return %c0_i32, %c0_i32_0, %c0_i32_1 : i32, i32, i32
  }
  func.func @transform_1(%arg0: i32) -> (i32, i32) {
    %c0_i32 = arith.constant 0 : i32
    %c0_i32_0 = arith.constant 0 : i32
    %c0_i32_1 = arith.constant 0 : i32
    return %c0_i32, %c0_i32_0 : i32, i32
  }
  func.func @transform_2(%arg0: i32) -> (i32, i32) {
    %c0_i32 = arith.constant 0 : i32
    %c0_i32_0 = arith.constant 0 : i32
    %c0_i32_1 = arith.constant 0 : i32
    return %c0_i32, %c0_i32_0 : i32, i32
  }
  func.func @transform_3(%arg0: i32) -> (i32, i32, i32) {
    %c0_i32 = arith.constant 0 : i32
    %c0_i32_0 = arith.constant 0 : i32
    %c0_i32_1 = arith.constant 0 : i32
    %c0_i32_2 = arith.constant 0 : i32
    return %c0_i32, %c0_i32_0, %c0_i32_1 : i32, i32, i32
  }
  func.func @transform_4(%arg0: i32) -> (i32, i32) {
    %c0_i32 = arith.constant 0 : i32
    %c0_i32_0 = arith.constant 0 : i32
    %c0_i32_1 = arith.constant 0 : i32
    return %c0_i32, %c0_i32_0 : i32, i32
  }
  func.func @transform_5(%arg0: i32) -> (i32, i32) {
    %c0_i32 = arith.constant 0 : i32
    %c0_i32_0 = arith.constant 0 : i32
    %c0_i32_1 = arith.constant 0 : i32
    return %c0_i32, %c0_i32_0 : i32, i32
  }
  func.func @transform_6(%arg0: i32) -> (i32, i32) {
    %c0_i32 = arith.constant 0 : i32
    %c0_i32_0 = arith.constant 0 : i32
    %c0_i32_1 = arith.constant 0 : i32
    return %c0_i32, %c0_i32_0 : i32, i32
  }
  func.func @transform_7(%arg0: i32) -> (i32, i32) {
    %c0_i32 = arith.constant 0 : i32
    %c0_i32_0 = arith.constant 0 : i32
    %c0_i32_1 = arith.constant 0 : i32
    return %c0_i32, %c0_i32_0 : i32, i32
  }
}

</mosaic_0001>

<bundles_post_ra>
// kernel: tpu_custom_call.1
= control target key start
LH: loop header
LB: loop body
LE: loop exit
PB: predicated region body
PF: predicated region fallthrough
CT: control target
= control target key end

     0   :  { %vm49_vm0 = vcmask 1043456   ;;  %vm42_vm1 = vcmask 64512   ;;  %vm102_vm2 = vcmask 257024   ;;  %v861_v8 = vmov 0   ;;  %s862_s30 = smov 32   ;;  %s863_s8 = smov 96   ;;  %s1155_s1 = inlined_call_operand.vmem [shape: bf16[8,32], index: 1, kind: input, shape index: {}]   ;;  %s1156_s0 = inlined_call_operand.vmem [shape: f32[2,16,8], index: 0, kind: input, shape index: {}]   ;;  %s1157_s3 = inlined_call_operand.vmem [shape: bf16[2,160,32], index: 3, kind: input, shape index: {}]   ;;  %s1158_s2 = inlined_call_operand.vmem [shape: f32[1,32], index: 2, kind: input, shape index: {}]   ;;  %s1159_s4 = inlined_call_operand.vmem [shape: f32[2,32], index: 4, kind: input, shape index: {}]   ;;  %s1160_s5 = inlined_call_operand.vmem [shape: f32[16,32], index: 5, kind: input, shape index: {}]   ;;  %s1161_s6 = inlined_call_operand.<no memory space> [shape: f32[1,1], index: 6, kind: input, shape index: {}]   ;;  %s1162_s7 = inlined_call_operand.vmem [shape: f32[2,1], index: 7, kind: output, shape index: {}]  }
   0x1   :  { %v34_v0 = vld [vmem:[%s1155_s1] sm:$0xf]  ;;  %v29_v2 = vld [vmem:[%s1156_s0 + $0x8] sm:$0xff]  ;;  %v30_v5 = vld [vmem:[%s1156_s0 + $0x10] sm:$0xff]  ;;  %107 = vst.msk [vmem:[#allocation2 + $0xc] sm:$0xf] %vm102_vm2, %v861_v8  ;;  %348 = vmatprep.subr.bf16.mxu1 %v861_v8 }
   0x2   :  { %v28_v1 = vld [vmem:[%s1156_s0] sm:$0xff]  ;;  %828 = vmatprep.subr.msk.bf16.mxu0 %vm49_vm0, %v34_v0  ;;  %v51_v3 = vsel %vm49_vm0, %v34_v0, 0  ;;  %v31_v6 = vld [vmem:[%s1156_s0 + $0x18] sm:$0xff]  ;;  %103 = vst.msk [vmem:[#allocation2] sm:$0xf] %vm102_vm2, %v861_v8  ;;  %vm105_vm3 = vcmask 254976  }
   0x3   :  { %v32_v4 = vpack.c.bf16 %v29_v2, %v28_v1  ;;  %823 = vmatpush3.bf16.msra.mxu0 %v51_v3  ;;  %v33_v7 = vpack.c.bf16 %v31_v6, %v30_v5  ;;  %104 = vst.msk [vmem:[#allocation2 + $0x4] sm:$0xf] %vm102_vm2, %v861_v8  ;;  %108 = vst.msk [vmem:[#allocation2 + $0x10] sm:$0xf] %vm102_vm2, %v861_v8  ;;  %v837_v9 = vld [vmem:[%s1157_s3 + $0x38] sm:$0xff]   ;;  %v838_v10 = vld [vmem:[%s1157_s3 + $0x30] sm:$0xff]  }
   0x4   :  { %637 = vmatprep.subr.bf16.mxu0 %v861_v8  ;;  %109 = vst.msk [vmem:[#allocation2 + $0x14] sm:$0x3] %vm105_vm3, %v861_v8  ;;  %106 = vst.msk [vmem:[#allocation2 + $0x8] sm:$0x3] %vm105_vm3, %v861_v8  ;;  %349 = vmatpush1.bf16.msra.mxu1 %v837_v9  ;;  %v839_v11 = vld [vmem:[%s1157_s3 + $0x28] sm:$0xff]   ;;  %v840_v12 = vld [vmem:[%s1157_s3 + $0x20] sm:$0xff]  }
   0x5   :  { %824 = vmatprep.mubr.msk.bf16.mxu0 %vm42_vm1, %v32_v4  ;;  %350 = vmatprep.subr.bf16.mxu1 %v861_v8  ;;  %v841_v13 = vld [vmem:[%s1157_s3 + $0x18] sm:$0xff]   ;;  %v842_v14 = vld [vmem:[%s1157_s3 + $0x10] sm:$0xff]   ;;  %v843_v15 = vld [vmem:[%s1157_s3 + $0x8] sm:$0xff]   ;;  %vm145_vm4 = vcmask 257025   ;;  %vm126_vm5 = vcmask 1040384   ;;  %vm127_vm6 = vcmask 1044484  }
   0x6   :  { %825 = vmatmul.mubr.msk.bf16.vlgmr.msra.gmra.mxu0 %vm42_vm1, %v33_v7  ;;  %v844_v16 = vld [vmem:[%s1157_s3] sm:$0xff]   ;;  %v845_v17 = vld [vmem:[%s1157_s3 + $0x48] sm:$0xff]   ;;  %vm984_vm7 = vmor %vm126_vm5, %vm127_vm6  ;;  %vm148_vm8 = vcmask 253952   ;;  %vm238_vm9 = vcmask 1045504   ;;  %vm245_vm10 = vcmask 261120   ;;  %vm204_vm13 = vcmask 1046528  }
   0x7   :  { %v746_v18 = vld [vmem:[%s1158_s2] ss:$0 sm:$0xff]  ;;  %vm175_vm11 = vsmask.f32 7424  ;;  %vm215_vm12 = vsmask.f32 6400 }
   0x8   :  { %351 = vmatpush1.bf16.msra.mxu1 %v838_v10  ;;  %v846_v46 = vld [vmem:[%s1157_s3 + $0x40] sm:$0xff]   ;;  %s864_s9 = smov 64   ;;  %vm250_vm14 = vcmask 523264   ;;  %vm255_vm15 = vcmask 785408   ;;  %vm737_vm0 = vcmask 1041409   ;;  %vm740_vm1 = vcmask 1024  }
   0x9   :  { %352 = vmatprep.subr.bf16.mxu1 %v861_v8 }
   0xc   :  { %353 = vmatpush1.bf16.msra.mxu1 %v839_v11 }
   0xd   :  { %354 = vmatprep.subr.bf16.mxu1 %v861_v8 }
  0x10   :  { %355 = vmatpush1.bf16.msra.mxu1 %v840_v12 }
  0x11   :  { %356 = vmatprep.subr.bf16.mxu1 %v861_v8 }
  0x14   :  { %357 = vmatpush1.bf16.msra.mxu1 %v841_v13 }
  0x15   :  { %358 = vmatprep.subr.bf16.mxu1 %v861_v8 }
  0x18   :  { %359 = vmatpush1.bf16.msra.mxu1 %v842_v14 }
  0x19   :  { %360 = vmatprep.subr.bf16.mxu1 %v861_v8 }
  0x1c   :  { %361 = vmatpush1.bf16.msra.mxu1 %v843_v15 }
  0x1d   :  { %362 = vmatprep.subr.bf16.mxu1 %v861_v8 }
  0x20   :  { %363 = vmatpush1.bf16.msra.mxu1 %v844_v16 }
  0x21   :  { %376 = vmatprep.subr.bf16.mxu1 %v861_v8 }
  0x24   :  { %377 = vmatpush2.bf16.msra.mxu1 %v845_v17 }
  0x25   :  { %378 = vmatprep.subr.bf16.mxu1 %v861_v8 }
  0x28   :  { %379 = vmatpush2.bf16.msra.mxu1 %v846_v46 }
  0xc6   :  { %v826_v19 = vpop.f32.mrf.mxu0 }
  0xc7   :  { %v971_v20 = vadd.f32 %v826_v19, %v746_v18 }
  0xc8   :  { %v87_v21 = vpop.f32.mrf.mxu0 }
  0xc9   :  { %v112_v22 = vmax.f32 %v971_v20, 0.0  ;;  %v974_v23 = vadd.f32 %v746_v18, %v87_v21 }
  0xca   :  { %v827_v24 = vpop.f32.mrf.mxu0 }
  0xcb   :  { %v813_v25 = vpack.c.bf16 %v112_v22, %v112_v22  ;;  %v110_v26 = vmax.f32 %v974_v23, 0.0  ;;  %v977_v27 = vadd.f32 %v827_v24, %v746_v18 }
  0xcc   :  { %v90_v28 = vpop.f32.mrf.mxu0 }
  0xcd   :  { %v134_v29 = vrot.slane %v813_v25, 7  ;;  %v811_v30 = vpack.c.bf16 %v110_v26, %v110_v26  ;;  %v113_v31 = vmax.f32 %v977_v27, 0.0  ;;  %v980_v32 = vadd.f32 %v746_v18, %v90_v28 }
  0xcf   :  { %150 = vst.msk [vmem:[#allocation2 + $0xc] sm:$0xe] %vm145_vm4, %v134_v29  ;;  %v129_v33 = vrot.slane %v811_v30, 7  ;;  %v814_v34 = vpack.c.bf16 %v113_v31, %v113_v31  ;;  %v111_v35 = vmax.f32 %v980_v32, 0.0  ;;  %v135_v37 = vrot.slane %v134_v29, 4 }
  0xd1   :  { %146 = vst.msk [vmem:[#allocation2] sm:$0xe] %vm145_vm4, %v129_v33  ;;  %v136_v38 = vrot.slane %v814_v34, 7  ;;  %v812_v39 = vpack.c.bf16 %v111_v35, %v111_v35  ;;  %v130_v40 = vrot.slane %v129_v33, 4 }
  0xd3   :  { %v137_v41 = vsel %vm984_vm7, %v135_v37, %v136_v38  ;;  %v138_v42 = vrot.slane %v136_v38, 4  ;;  %v131_v43 = vrot.slane %v812_v39, 7 }
  0xd4   :  { %151 = vst.msk [vmem:[#allocation2 + $0x10] sm:$0xf] %vm102_vm2, %v137_v41 }
  0xd5   :  { %152 = vst.msk [vmem:[#allocation2 + $0x14] sm:$0x1] %vm148_vm8, %v138_v42  ;;  %v132_v44 = vsel %vm984_vm7, %v130_v40, %v131_v43  ;;  %v133_v45 = vrot.slane %v131_v43, 4 }
  0xd6   :  { %147 = vst.msk [vmem:[#allocation2 + $0x4] sm:$0xf] %vm102_vm2, %v132_v44 }
  0xd7   :  { %149 = vst.msk [vmem:[#allocation2 + $0x8] sm:$0x1] %vm148_vm8, %v133_v45 }
  0xdb   :  { %v1000_v47 = vld [vmem:[#allocation2 + $0xc] sm:$0xff]  }
  0xdc   :  { %v1002_v48 = vld [vmem:[#allocation2 + $0x14] ss:$0 sps:$4 sm:$0x33]   ;;  %v191_v50 = vshll.u32 %v1000_v47, 16  ;;  %v189_v55 = vshrl.u32 %v1000_v47, 16  ;;  %v208_v21 = vrot.slane %v1000_v47, 1 }
  0xdd   :  { %v1004_v49 = vld [vmem:[#allocation2] sm:$0xff]   ;;  %v196_v59 = vshll.u32 %v1002_v48, 16  ;;  %v228_v13 = vshrl.u32 %v1002_v48, 16  ;;  %v209_v22 = vrot.slane %v1002_v48, 1  ;;  %v242_v33 = vrot.slane %v1000_v47, 2 }
  0xde   :  { %v834_v51 = vld [vmem:[#allocation2 + $0x8] ss:$0 sps:$4 sm:$0x33]   ;;  %v239_v52 = vrot.slane %v1004_v49, 2  ;;  %v177_v53 = vshrl.u32 %v1004_v49, 16  ;;  %v179_v54 = vshll.u32 %v1004_v49, 16 }
  0xdf   :  { %v240_v56 = vrot.slane %v834_v51, 2  ;;  %v184_v57 = vshll.u32 %v834_v51, 16  ;;  %v219_v58 = vshrl.u32 %v834_v51, 16  ;;  %v193_v63 = vrot.slane %v191_v50, 1 }
  0xe0   :  { %v181_v60 = vrot.slane %v179_v54, 1  ;;  %v216_v61 = vrot.slane %v177_v53, 1  ;;  %v217_v62 = vrot.slane %v179_v54, 2  ;;  %v205_v7 = vrot.slane %v1004_v49, 1  ;;  %v858_v54 = vld [vmem:[%s1157_s3 + $0x50] sm:$0xff]  }
  0xe1   :  { %v241_v0 = vsel %vm238_vm9, %v239_v52, %v240_v56  ;;  %v186_v1 = vrot.slane %v184_v57, 1  ;;  %v221_v2 = vrot.slane %v219_v58, 1  ;;  %v222_v3 = vrot.slane %v184_v57, 2  ;;  %v856_v52 = vld [vmem:[%s1157_s3 + $0x60] sm:$0xff]  }
  0xe2   :  { %767 = vmatprep.mubr.msk.bf16.mxu1 %vm245_vm10, %v241_v0  ;;  %v182_v4 = vor.u32 %v181_v60, %v177_v53  ;;  %v218_v5 = vor.u32 %v217_v62, %v216_v61  ;;  %v206_v9 = vrot.slane %v834_v51, 1  ;;  %v194_v11 = vor.u32 %v193_v63, %v189_v55  ;;  %v855_v51 = vld [vmem:[%s1157_s3 + $0x68] sm:$0xff]   ;;  %v857_v53 = vld [vmem:[%s1157_s3 + $0x58] sm:$0xff]   ;;  %v769_v56 = vld [vmem:[%s1159_s4] ss:$0 sm:$0xff] }
  0xe3   :  { %v223_v6 = vor.u32 %v222_v3, %v221_v2  ;;  %v198_v12 = vrot.slane %v196_v59, 1  ;;  %v225_v15 = vrot.slane %v189_v55, 1  ;;  %v226_v16 = vrot.slane %v191_v50, 2  ;;  %v854_v50 = vld [vmem:[%s1157_s3 + $0x70] sm:$0xff]  }
  0xe4   :  { %v187_v10 = vsel %vm175_vm11, %v182_v4, %v186_v1  ;;  %v231_v17 = vrot.slane %v196_v59, 2  ;;  %v230_v18 = vrot.slane %v228_v13, 1  ;;  %v207_v19 = vsel %vm204_vm13, %v205_v7, %v206_v9 }
  0xe5   :  { %200 = vrot.lane.b32.xlu0 %v187_v10, %s862_s30  ;;  %v224_v14 = vsel %vm215_vm12, %v218_v5, %v223_v6  ;;  %v199_v24 = vsel %vm175_vm11, %v194_v11, %v198_v12  ;;  %v227_v25 = vor.u32 %v226_v16, %v225_v15  ;;  %v210_v28 = vsel %vm204_vm13, %v208_v21, %v209_v22  ;;  %v860_v21 = vld [vmem:[%s1157_s3 + $0x90] sm:$0xff]  }
  0xe6   :  { %234 = vrot.lane.b32.xlu1 %v224_v14, %s863_s8  ;;  %v232_v26 = vor.u32 %v231_v17, %v230_v18  ;;  %v243_v34 = vrot.slane %v1002_v48, 2  ;;  %v851_v48 = vld [vmem:[%s1157_s3 + $0x88] sm:$0xff]   ;;  %v859_v17 = vld [vmem:[%s1157_s3 + $0x98] sm:$0xff]  }
  0xe7   :  { %638 = vmatpush1.bf16.msra.mxu0 %v851_v48 }
  0xe8   :  { %v233_v29 = vsel %vm215_vm12, %v227_v25, %v232_v26  ;;  %v244_v41 = vsel %vm238_vm9, %v242_v33, %v243_v34  ;;  %639 = vmatprep.subr.bf16.mxu0 %v861_v8 }
  0xe9   :  { %211 = vrot.lane.b32.xlu0 %v207_v19, %s864_s9 }
  0xea   :  { %202 = vrot.lane.b32.xlu1 %v199_v24, %s862_s30 }
  0xed   :  { %213 = vrot.lane.b32.xlu0 %v210_v28, %s864_s9 }
  0xee   :  { %236 = vrot.lane.b32.xlu1 %v233_v29, %s863_s8 }
 0x157   :  { %v201_v30 = vpop.permute.xlu0 %200 }
 0x158   :  { %v235_v31 = vpop.permute.xlu1 %234  ;;  %v247_v35 = vsel %vm245_vm10, %v1004_v49, %v201_v30  ;;  %v852_v49 = vld [vmem:[%s1157_s3 + $0x80] sm:$0xff]  }
 0x159   :  { %640 = vmatpush1.bf16.msra.mxu0 %v852_v49 }
 0x15a   :  { %641 = vmatprep.subr.bf16.mxu0 %v861_v8 }
 0x15b   :  { %v212_v37 = vpop.permute.xlu0 %211 }
 0x15c   :  { %v252_v38 = vsel %vm250_vm14, %v247_v35, %v212_v37  ;;  %v203_v39 = vpop.permute.xlu1 %202 }
 0x15d   :  { %v257_v40 = vsel %vm255_vm15, %v252_v38, %v235_v31  ;;  %v249_v43 = vsel %vm245_vm10, %v1000_v47, %v203_v39  ;;  %v853_v47 = vld [vmem:[%s1157_s3 + $0x78] sm:$0xff]  }
 0x15e   :  { %381 = vmatmul.mubr.bf16.vlgmr.msra.gmra.mxu1 %v257_v40  ;;  %642 = vmatpush1.bf16.msra.mxu0 %v853_v47 }
 0x15f   :  { %768 = vmatprep.mubr.msk.bf16.mxu1 %vm245_vm10, %v244_v41  ;;  %v214_v42 = vpop.permute.xlu0 %213  ;;  %643 = vmatprep.subr.bf16.mxu0 %v861_v8 }
 0x160   :  { %v254_v44 = vsel %vm250_vm14, %v249_v43, %v214_v42  ;;  %v237_v45 = vpop.permute.xlu1 %236 }
 0x161   :  { %v260_v46 = vsel %vm255_vm15, %v254_v44, %v237_v45 }
 0x162   :  { %644 = vmatpush1.bf16.msra.mxu0 %v854_v50 }
 0x163   :  { %645 = vmatprep.subr.bf16.mxu0 %v861_v8 }
 0x166   :  { %389 = vmatmul.mubr.bf16.gmra.mxu1 %v260_v46  ;;  %646 = vmatpush1.bf16.msra.mxu0 %v855_v51 }
 0x167   :  { %647 = vmatprep.subr.bf16.mxu0 %v861_v8 }
 0x16a   :  { %648 = vmatpush1.bf16.msra.mxu0 %v856_v52 }
 0x16b   :  { %649 = vmatprep.subr.bf16.mxu0 %v861_v8 }
 0x16e   :  { %650 = vmatpush1.bf16.msra.mxu0 %v857_v53 }
 0x16f   :  { %651 = vmatprep.subr.bf16.mxu0 %v861_v8 }
 0x172   :  { %652 = vmatpush1.bf16.msra.mxu0 %v858_v54 }
 0x173   :  { %665 = vmatprep.subr.bf16.mxu0 %v861_v8 }
 0x176   :  { %666 = vmatpush2.bf16.msra.mxu0 %v859_v17 }
 0x177   :  { %667 = vmatprep.subr.bf16.mxu0 %v861_v8 }
 0x17a   :  { %668 = vmatpush2.bf16.msra.mxu0 %v860_v21 }
 0x21e   :  { %v382_v55 = vpop.f32.mrf.mxu1 }
 0x21f   :  { %v397_v57 = vadd.f32 %v382_v55, %v974_v23 }
 0x220   :  { %v384_v58 = vpop.f32.mrf.mxu1 }
 0x221   :  { %v1078_v59 = vadd.f32 %v769_v56, %v397_v57 }
 0x222   :  { %v385_v60 = vpop.f32.mrf.mxu1 }
 0x223   :  { %v410_v61 = vmax.f32 %v1078_v59, 0.0  ;;  %v398_v62 = vadd.f32 %v385_v60, %v980_v32 }
 0x224   :  { %v387_v63 = vpop.f32.mrf.mxu1 }
 0x225   :  { %v815_v0 = vpack.c.bf16 %v410_v61, %v410_v61  ;;  %v1082_v1 = vadd.f32 %v769_v56, %v398_v62 }
 0x226   :  { %v390_v2 = vpop.f32.mrf.mxu1 }
 0x227   :  { %v426_v3 = vrot.slane %v815_v0, 7  ;;  %v411_v4 = vmax.f32 %v1082_v1, 0.0  ;;  %v399_v5 = vadd.f32 %v390_v2, %v971_v20 }
 0x228   :  { %v392_v6 = vpop.f32.mrf.mxu1 }
 0x229   :  { %442 = vst.msk [vmem:[#allocation2] sm:$0xe] %vm145_vm4, %v426_v3  ;;  %v816_v23 = vpack.c.bf16 %v411_v4, %v411_v4  ;;  %v1087_v7 = vadd.f32 %v769_v56, %v399_v5  ;;  %v427_v10 = vrot.slane %v426_v3, 4 }
 0x22a   :  { %v393_v9 = vpop.f32.mrf.mxu1 }
 0x22b   :  { %v428_v11 = vrot.slane %v816_v23, 7  ;;  %v412_v32 = vmax.f32 %v1087_v7, 0.0  ;;  %v400_v12 = vadd.f32 %v393_v9, %v977_v27 }
 0x22c   :  { %v395_v13 = vpop.f32.mrf.mxu1 }
 0x22d   :  { %v429_v14 = vsel %vm984_vm7, %v427_v10, %v428_v11  ;;  %v430_v15 = vrot.slane %v428_v11, 4  ;;  %v817_v16 = vpack.c.bf16 %v412_v32, %v412_v32  ;;  %v1093_v20 = vadd.f32 %v769_v56, %v400_v12 }
 0x22e   :  { %443 = vst.msk [vmem:[#allocation2 + $0x4] sm:$0xf] %vm102_vm2, %v429_v14 }
 0x22f   :  { %444 = vst.msk [vmem:[#allocation2 + $0x8] sm:$0x1] %vm148_vm8, %v430_v15  ;;  %v431_v18 = vrot.slane %v817_v16, 7  ;;  %v413_v19 = vmax.f32 %v1093_v20, 0.0 }
 0x231   :  { %445 = vst.msk [vmem:[#allocation2 + $0xc] sm:$0xe] %vm145_vm4, %v431_v18  ;;  %v818_v27 = vpack.c.bf16 %v413_v19, %v413_v19  ;;  %v432_v22 = vrot.slane %v431_v18, 4 }
 0x233   :  { %v433_v24 = vrot.slane %v818_v27, 7 }
 0x235   :  { %v434_v25 = vsel %vm984_vm7, %v432_v22, %v433_v24  ;;  %v435_v26 = vrot.slane %v433_v24, 4  ;;  %v847_v28 = vld [vmem:[#allocation2] sm:$0xff]  }
 0x236   :  { %446 = vst.msk [vmem:[#allocation2 + $0x10] sm:$0xf] %vm102_vm2, %v434_v25  ;;  %v848_v29 = vld [vmem:[#allocation2 + $0x8] ss:$0 sps:$4 sm:$0x33]   ;;  %v530_v8 = vrot.slane %v847_v28, 2 }
 0x237   :  { %447 = vst.msk [vmem:[#allocation2 + $0x14] sm:$0x1] %vm148_vm8, %v435_v26  ;;  %v498_v30 = vrot.slane %v847_v28, 1  ;;  %v471_v31 = vshrl.u32 %v847_v28, 16  ;;  %v473_v33 = vshll.u32 %v847_v28, 16  ;;  %v531_v34 = vrot.slane %v848_v29, 2 }
 0x238   :  { %v499_v35 = vrot.slane %v848_v29, 1  ;;  %v478_v37 = vshll.u32 %v848_v29, 16  ;;  %v511_v38 = vshrl.u32 %v848_v29, 16  ;;  %v810_v26 = vld [vmem:[%s1159_s4 + $0x1] ss:$0 sm:$0xff] }
 0x239   :  { %v475_v39 = vrot.slane %v473_v33, 1  ;;  %v508_v40 = vrot.slane %v471_v31, 1  ;;  %v509_v41 = vrot.slane %v473_v33, 2  ;;  %v532_v36 = vsel %vm238_vm9, %v530_v8, %v531_v34  ;;  %v699_v8 = vld [vmem:[%s1160_s5] sm:$0xff] }
 0x23a   :  { %v500_v42 = vsel %vm204_vm13, %v498_v30, %v499_v35  ;;  %v480_v43 = vrot.slane %v478_v37, 1  ;;  %v513_v44 = vrot.slane %v511_v38, 1  ;;  %808 = vmatprep.mubr.msk.bf16.mxu0 %vm245_vm10, %v532_v36  ;;  %v514_v46 = vrot.slane %v478_v37, 2  ;;  %v700_v37 = vld [vmem:[%s1160_s5 + $0x8] sm:$0xff] }
 0x23b   :  { %504 = vrot.lane.b32.xlu1 %v500_v42, %s864_s9  ;;  %v476_v45 = vor.u32 %v475_v39, %v471_v31  ;;  %v510_v48 = vor.u32 %v509_v41, %v508_v40 }
 0x23c   :  { %v515_v47 = vor.u32 %v514_v46, %v513_v44 }
 0x23d   :  { %v481_v49 = vsel %vm175_vm11, %v476_v45, %v480_v43  ;;  %v849_v50 = vld [vmem:[#allocation2 + $0xc] sm:$0xff]  }
 0x23e   :  { %494 = vrot.lane.b32.xlu0 %v481_v49, %s862_s30  ;;  %v850_v51 = vld [vmem:[#allocation2 + $0x14] ss:$0 sps:$4 sm:$0x33]   ;;  %v483_v52 = vshrl.u32 %v849_v50, 16  ;;  %v485_v53 = vshll.u32 %v849_v50, 16  ;;  %v516_v54 = vsel %vm215_vm12, %v510_v48, %v515_v47  ;;  %v501_v55 = vrot.slane %v849_v50, 1 }
 0x23f   :  { %v490_v56 = vshll.u32 %v850_v51, 16  ;;  %v520_v57 = vshrl.u32 %v850_v51, 16  ;;  %v502_v58 = vrot.slane %v850_v51, 1  ;;  %v533_v32 = vrot.slane %v849_v50, 2 }
 0x240   :  { %v487_v60 = vrot.slane %v485_v53, 1  ;;  %v517_v61 = vrot.slane %v483_v52, 1  ;;  %v518_v62 = vrot.slane %v485_v53, 2  ;;  %v534_v12 = vrot.slane %v850_v51, 2 }
 0x241   :  { %v492_v63 = vrot.slane %v490_v56, 1  ;;  %v522_v0 = vrot.slane %v520_v57, 1  ;;  %v523_v2 = vrot.slane %v490_v56, 2  ;;  %v503_v4 = vsel %vm204_vm13, %v501_v55, %v502_v58 }
 0x242   :  { %526 = vrot.lane.b32.xlu0 %v516_v54, %s863_s8  ;;  %v488_v3 = vor.u32 %v487_v60, %v483_v52  ;;  %v519_v6 = vor.u32 %v518_v62, %v517_v61  ;;  %v535_v17 = vsel %vm238_vm9, %v533_v32, %v534_v12 }
 0x243   :  { %v524_v23 = vor.u32 %v523_v2, %v522_v0 }
 0x244   :  { %v493_v5 = vsel %vm175_vm11, %v488_v3, %v492_v63 }
 0x245   :  { %496 = vrot.lane.b32.xlu1 %v493_v5, %s862_s30  ;;  %v525_v9 = vsel %vm215_vm12, %v519_v6, %v524_v23 }
 0x246   :  { %506 = vrot.lane.b32.xlu0 %v503_v4, %s864_s9  ;;  %v732_v4 = vstv %s1161_s6 }
 0x249   :  { %528 = vrot.lane.b32.xlu1 %v525_v9, %s863_s8 }
 0x2ad   :  { %v505_v13 = vpop.permute.xlu1 %504 }
 0x2b0   :  { %v495_v10 = vpop.permute.xlu0 %494 }
 0x2b1   :  { %v537_v11 = vsel %vm245_vm10, %v847_v28, %v495_v10 }
 0x2b2   :  { %v541_v14 = vsel %vm250_vm14, %v537_v11, %v505_v13 }
 0x2b4   :  { %v527_v15 = vpop.permute.xlu0 %526 }
 0x2b5   :  { %v545_v16 = vsel %vm255_vm15, %v541_v14, %v527_v15 }
 0x2b6   :  { %670 = vmatmul.mubr.bf16.vlgmr.msra.gmra.mxu0 %v545_v16 }
 0x2b7   :  { %809 = vmatprep.mubr.msk.bf16.mxu0 %vm245_vm10, %v535_v17  ;;  %v497_v18 = vpop.permute.xlu1 %496 }
 0x2b8   :  { %v539_v19 = vsel %vm245_vm10, %v849_v50, %v497_v18  ;;  %v507_v27 = vpop.permute.xlu0 %506 }
 0x2b9   :  { %v543_v21 = vsel %vm250_vm14, %v539_v19, %v507_v27 }
 0x2bb   :  { %v529_v22 = vpop.permute.xlu1 %528 }
 0x2bc   :  { %v548_v24 = vsel %vm255_vm15, %v543_v21, %v529_v22 }
 0x2be   :  { %678 = vmatmul.mubr.bf16.gmra.mxu0 %v548_v24 }
 0x376   :  { %v671_v25 = vpop.f32.mrf.mxu0 }
 0x377   :  { %v686_v28 = vadd.f32 %v671_v25, %v1078_v59 }
 0x378   :  { %v673_v29 = vpop.f32.mrf.mxu0 }
 0x379   :  { %v695_v30 = vadd.f32 %v810_v26, %v686_v28 }
 0x37a   :  { %v674_v31 = vpop.f32.mrf.mxu0 }
 0x37b   :  { %v687_v33 = vadd.f32 %v674_v31, %v1082_v1  ;;  %v701_v34 = vmul.f32 %v699_v8, %v695_v30 }
 0x37c   :  { %v676_v35 = vpop.f32.mrf.mxu0 }
 0x37d   :  { %v696_v38 = vadd.f32 %v810_v26, %v687_v33  ;;  %v705_v39 = vsel %vm245_vm10, %v701_v34, 0.0 }
 0x37e   :  { %706 = vadd.xlane.f32.xlu0 %v705_v39  ;;  %v679_v59 = vpop.f32.mrf.mxu0 }
 0x37f   :  { %v688_v40 = vadd.f32 %v679_v59, %v1087_v7  ;;  %v702_v41 = vmul.f32 %v700_v37, %v696_v38 }
 0x380   :  { %v681_v36 = vpop.f32.mrf.mxu0 }
 0x381   :  { %v697_v42 = vadd.f32 %v810_v26, %v688_v40  ;;  %v708_v43 = vsel %vm245_vm10, %v702_v41, 0.0 }
 0x382   :  { %709 = vadd.xlane.f32.xlu1 %v708_v43  ;;  %v682_v1 = vpop.f32.mrf.mxu0 }
 0x383   :  { %v689_v44 = vadd.f32 %v682_v1, %v1093_v20  ;;  %v703_v45 = vmul.f32 %v699_v8, %v697_v42 }
 0x384   :  { %v684_v46 = vpop.f32.mrf.mxu0 }
 0x385   :  { %v698_v48 = vadd.f32 %v810_v26, %v689_v44  ;;  %v711_v49 = vsel %vm245_vm10, %v703_v45, 0.0 }
 0x386   :  { %712 = vadd.xlane.f32.xlu0 %v711_v49 }
 0x387   :  { %v704_v47 = vmul.f32 %v700_v37, %v698_v48 }
 0x389   :  { %v714_v50 = vsel %vm245_vm10, %v704_v47, 0.0 }
 0x38a   :  { %715 = vadd.xlane.f32.xlu0 %v714_v50 }
 0x407   :  { %v707_v7 = vpop.xlane.xlu0 %706 }
 0x40b   :  { %v710_v51 = vpop.xlane.xlu1 %709 }
 0x40c   :  { %v717_v52 = vadd.f32 %v710_v51, %v707_v7 }
 0x40e   :  { %v718_v53 = vrot.slane %v717_v52, 4 }
 0x40f   :  { %v713_v54 = vpop.xlane.xlu0 %712 }
 0x410   :  { %v719_v55 = vadd.f32 %v718_v53, %v717_v52 }
 0x412   :  { %v720_v56 = vrot.slane %v719_v55, 2 }
 0x413   :  { %v716_v57 = vpop.xlane.xlu0 %715 }
 0x414   :  { %v724_v58 = vadd.f32 %v716_v57, %v713_v54  ;;  %v721_v20 = vadd.f32 %v720_v56, %v719_v55 }
 0x416   :  { %v725_v60 = vrot.slane %v724_v58, 4  ;;  %v722_v62 = vrot.slane %v721_v20, 1 }
 0x418   :  { %v726_v61 = vadd.f32 %v725_v60, %v724_v58  ;;  %v723_v2 = vadd.f32 %v722_v62, %v721_v20 }
 0x41a   :  { %v727_v63 = vrot.slane %v726_v61, 2  ;;  %v733_v6 = vadd.f32 %v732_v4, %v723_v2 }
 0x41c   :  { %v728_v0 = vadd.f32 %v727_v63, %v726_v61 }
 0x41e   :  { %v729_v3 = vrot.slane %v728_v0, 1 }
 0x420   :  { %v730_v5 = vadd.f32 %v729_v3, %v728_v0 }
 0x422   :  { %v734_v23 = vadd.f32 %v732_v4, %v730_v5 }
 0x424   :  { %v738_v9 = vsel %vm737_vm0, %v734_v23, %v733_v6 }
 0x425   :  { %741 = vst.msk [vmem:[%s1162_s7] sm:$0x3] %vm740_vm1, %v738_v9 }

</bundles_post_ra>
